<compile_context>
chip_gen: v6e
topology: v6e:2x2x1
jax: 0.10.0
libtpu: 0.0.40
codegen_flags: <defaults>
</compile_context>

<pallas_src>
import jax
import jax.numpy as jnp
from jax.experimental import pallas as pl
from jax.experimental.pallas import tpu as pltpu


def _normalize_clip_kernel(x_ref, scale_ref, bias_ref, o_ref):
    # x_ref: (rb, cb) tile; scale/bias: (rb, 1) f32 per-row affine params,
    # broadcast over the lane axis.
    y = x_ref[...].astype(jnp.float32) * scale_ref[...] + bias_ref[...]
    o_ref[...] = jnp.clip(y, 0.0, 1.0).astype(o_ref.dtype)


def _target_tile_bytes():
    """Bytes of input per block; generation-aware with a safe fallback."""
    target = 2 * 1024 * 1024                       # safe on every generation (v5e: 16 MiB scoped)
    try:
        info = pltpu.get_tpu_info()
        ver = str(getattr(info, "chip_version", getattr(info, "version", ""))).lower()
        if "7" in ver:
            target = 4 * 1024 * 1024               # v7x: 3.2 TB/s HBM, amortize per-step overhead
        elif "6" in ver:
            target = 3 * 1024 * 1024               # v6e: 32 MiB scoped default
    except Exception:
        pass
    return target


def _fold_factor(rows, cols):
    """Fold columns into rows when N*C < 8, keeping the width a multiple of 128."""
    k = 1
    while rows * k < 8 and cols % (2 * k) == 0 and (cols // (2 * k)) % 128 == 0:
        k *= 2
    return k


def _choose_block(rows, cols, itemsize, target_bytes):
    """Pick (rb, cb): lane-dense column block first, then rows up to target."""
    # Column (lane) block: full width when it fits 8 rows in the target,
    # otherwise a multiple of 128 lanes so the block always fits VMEM.
    if cols <= 128 or cols * itemsize * 8 <= target_bytes:
        cb = cols
    else:
        cb = max(128, (target_bytes // (8 * itemsize)) // 128 * 128)

    # Row (sublane) block: multiple of 8 (or full extent).
    if cb == cols:
        rb = target_bytes // max(cb * itemsize, 1)
        if rb >= rows:
            rb = rows
        else:
            rb = max(8, (rb // 8) * 8)
            rb = min(rb, rows) if rb < rows else rows
    else:
        rb = rows if rows <= 8 else 8

    # Guarantee >= 2 grid blocks (v7x has 2 TensorCores; negligible cost
    # elsewhere since this only triggers when everything fits one tile).
    if pl.cdiv(rows, rb) * pl.cdiv(cols, cb) < 2:
        if rows >= 16:
            rb = max(8, (rows // 2) // 8 * 8)
        elif cols >= 256:
            cb = max(128, (cols // 2) // 128 * 128)
    return rb, cb


def normalize_clip(x, mean, std):
    """x: (N, C, H, W); mean/std: length-C sequences of floats."""
    N, C, H, W = x.shape
    dtype = x.dtype
    rows, cols = N * C, H * W

    # Per-channel affine params in float32 (std == 0 -> inf/NaN, as in PyTorch).
    mean_f = jnp.asarray(mean, dtype=jnp.float32)
    std_f = jnp.asarray(std, dtype=jnp.float32)
    min_v = mean_f - 2.0 * std_f                       # (C,)
    max_v = mean_f + 2.0 * std_f                       # (C,)
    scale_c = 1.0 / (max_v - min_v)
    bias_c = -min_v * scale_c

    # One scalar per flattened row: row = n*C + c  ->  channel = row % C.
    scale_rows = jnp.broadcast_to(scale_c[None, :], (N, C)).reshape(rows)
    bias_rows = jnp.broadcast_to(bias_c[None, :], (N, C)).reshape(rows)

    # Optionally fold columns into rows for sublane/lane density (N*C < 8).
    k = _fold_factor(rows, cols)
    if k > 1:
        rows, cols = rows * k, cols // k
        scale_rows = jnp.repeat(scale_rows, k)
        bias_rows = jnp.repeat(bias_rows, k)

    scale_r = scale_rows.reshape(rows, 1)
    bias_r = bias_rows.reshape(rows, 1)
    x2 = x.reshape(rows, cols)                         # free for contiguous NCHW

    itemsize = x2.dtype.itemsize
    rb, cb = _choose_block(rows, cols, itemsize, _target_tile_bytes())
    grid = (pl.cdiv(rows, rb), pl.cdiv(cols, cb))

    out2 = pl.pallas_call(
        _normalize_clip_kernel,
        out_shape=jax.ShapeDtypeStruct((rows, cols), dtype),
        grid=grid,
        in_specs=[
            pl.BlockSpec((rb, cb), lambda i, j: (i, j)),
            pl.BlockSpec((rb, 1), lambda i, j: (i, 0)),   # re-DMA only when i changes
            pl.BlockSpec((rb, 1), lambda i, j: (i, 0)),
        ],
        out_specs=pl.BlockSpec((rb, cb), lambda i, j: (i, j)),
        compiler_params=pltpu.CompilerParams(
            dimension_semantics=("parallel", "parallel"),
        ),
        cost_estimate=pl.CostEstimate(
            flops=4 * rows * cols,
            transcendentals=0,
            bytes_accessed=2 * rows * cols * itemsize + 2 * rows * 4,
        ),
    )(x2, scale_r, bias_r)

    return out2.reshape(N, C, H, W)


def normalize_clip_ref(x, mean, std):
    """Pure-JAX reference mirroring the PyTorch forward."""
    dtype = x.dtype
    mean = jnp.asarray(mean, dtype=dtype)
    std = jnp.asarray(std, dtype=dtype)
    shape = (-1,) + (1,) * (x.ndim - 2)
    min_v = (mean - 2.0 * std).reshape(shape)
    max_v = (mean + 2.0 * std).reshape(shape)
    y = (x - min_v) / (max_v - min_v)
    return jnp.clip(y, 0.0, 1.0)


if __name__ == "__main__":
    key = jax.random.PRNGKey(0)
    N, C, H, W = 2, 4, 16, 16

    mean = [0.5, 1.0, -0.25, 2.0]
    std = [0.25, 0.5, 0.75, 1.0]
    x = jax.random.normal(key, (N, C, H, W), dtype=jnp.float32) * 2.0 + 0.5

    out = jax.block_until_ready(normalize_clip(x, mean, std))
    ref = normalize_clip_ref(x, mean, std)
    assert out.shape == (N, C, H, W)
    assert out.dtype == jnp.float32
    assert jnp.allclose(out, ref, atol=1e-6, rtol=1e-6)
    assert float(jnp.min(out)) >= 0.0 and float(jnp.max(out)) <= 1.0

    # Extra small-shape coverage: partial column blocks (H*W not a multiple of
    # 128), partial row blocks (rows not a multiple of the row tile), and the
    # rows<8 folding path.
    for shape in [(1, 3, 20, 20), (5, 4, 16, 16), (1, 4, 16, 16)]:
        n2, c2, h2, w2 = shape
        m2 = [float(v) for v in range(1, c2 + 1)]
        s2 = [0.5 + 0.1 * v for v in range(c2)]
        x2 = jax.random.normal(jax.random.PRNGKey(1), shape, dtype=jnp.float32)
        o2 = jax.block_until_ready(normalize_clip(x2, m2, s2))
        r2 = normalize_clip_ref(x2, m2, s2)
        assert o2.shape == shape and jnp.allclose(o2, r2, atol=1e-6, rtol=1e-6)

    print("KERNEL_OK")
</pallas_src>

<mosaic_0001>
module attributes {stable_mosaic.version = 11 : i64} {
  func.func @_normalize_clip_kernel(%arg0: i32, %arg1: i32, %arg2: memref<8x128xf32, #tpu.memory_space<vmem>>, %arg3: memref<8x1xf32, #tpu.memory_space<vmem>>, %arg4: memref<8x1xf32, #tpu.memory_space<vmem>>, %arg5: memref<8x128xf32, #tpu.memory_space<vmem>>) attributes {dimension_semantics = [#tpu.dimension_semantics<parallel>, #tpu.dimension_semantics<parallel>], iteration_bounds = array<i64: 1, 2>, scalar_prefetch = 0 : i64, scratch_operands = 0 : i64, tpu.core_type = #tpu.core_type<tc>, window_params = [{transform_indices = @transform_0, window_bounds = array<i64: 8, 128>}, {transform_indices = @transform_1, window_bounds = array<i64: 8, 1>}, {transform_indices = @transform_2, window_bounds = array<i64: 8, 1>}, {transform_indices = @transform_3, window_bounds = array<i64: 8, 128>}]} {
    %c0 = arith.constant 0 : index
    %c0_0 = arith.constant 0 : index
    %0 = vector.load %arg2[%c0, %c0_0] : memref<8x128xf32, #tpu.memory_space<vmem>>, vector<8x128xf32>
    %c0_1 = arith.constant 0 : index
    %c0_2 = arith.constant 0 : index
    %1 = vector.load %arg3[%c0_1, %c0_2] : memref<8x1xf32, #tpu.memory_space<vmem>>, vector<8x1xf32>
    %2 = vector.broadcast %1 : vector<8x1xf32> to vector<8x128xf32>
    %3 = arith.mulf %0, %2 : vector<8x128xf32>
    %c0_3 = arith.constant 0 : index
    %c0_4 = arith.constant 0 : index
    %4 = vector.load %arg4[%c0_3, %c0_4] : memref<8x1xf32, #tpu.memory_space<vmem>>, vector<8x1xf32>
    %5 = vector.broadcast %4 : vector<8x1xf32> to vector<8x128xf32>
    %6 = arith.addf %3, %5 : vector<8x128xf32>
    %cst = arith.constant 0.000000e+00 : f32
    %cst_5 = arith.constant 1.000000e+00 : f32
    %7 = vector.broadcast %cst : f32 to vector<8x128xf32>
    %8 = arith.maximumf %7, %6 : vector<8x128xf32>
    %9 = vector.broadcast %cst_5 : f32 to vector<8x128xf32>
    %10 = arith.minimumf %9, %8 : vector<8x128xf32>
    %c0_6 = arith.constant 0 : index
    %c0_7 = arith.constant 0 : index
    %11 = vector.load %arg5[%c0_6, %c0_7] : memref<8x128xf32, #tpu.memory_space<vmem>>, vector<8x128xf32>
    tpu.vector_store %arg5[%c0_6, %c0_7], %10 {strides = array<i32>} : memref<8x128xf32, #tpu.memory_space<vmem>>, vector<8x128xf32>,
    return
  }
  func.func @transform_0(%arg0: i32, %arg1: i32) -> (i32, i32) {
    %c0_i32 = arith.constant 0 : i32
    return %arg0, %arg1 : i32, i32
  }
  func.func @transform_1(%arg0: i32, %arg1: i32) -> (i32, i32) {
    %c0_i32 = arith.constant 0 : i32
    %c0_i32_0 = arith.constant 0 : i32
    return %arg0, %c0_i32 : i32, i32
  }
  func.func @transform_2(%arg0: i32, %arg1: i32) -> (i32, i32) {
    %c0_i32 = arith.constant 0 : i32
    %c0_i32_0 = arith.constant 0 : i32
    return %arg0, %c0_i32 : i32, i32
  }
  func.func @transform_3(%arg0: i32, %arg1: i32) -> (i32, i32) {
    %c0_i32 = arith.constant 0 : i32
    return %arg0, %arg1 : i32, i32
  }
}

</mosaic_0001>

<bundles_post_ra>
// kernel: tpu_custom_call.1
= control target key start
LH: loop header
LB: loop body
LE: loop exit
PB: predicated region body
PF: predicated region fallthrough
CT: control target
= control target key end

     0   :  { %8 = vsyncpa [#allocation3], 0  ;;  %s642_s0 = inlined_call_operand.vmem [shape: f32[8,256], index: 0, kind: input, shape index: {}]   ;;  %s643_s1 = inlined_call_operand.vmem [shape: f32[8,1], index: 1, kind: input, shape index: {}]   ;;  %s644_s2 = inlined_call_operand.vmem [shape: f32[8,1], index: 2, kind: input, shape index: {}]   ;;  %s645_s3 = inlined_call_operand.hbm [shape: f32[8,256], index: 3, kind: output, shape index: {}]  }
   0x1   :  { %10 = vsyncpa [#allocation3 + $0x1], 0  ;;  %s537_s12 = smov 0   ;;  %s539_s13 = smov 0  }
   0x2   :  { %s541_s14 = smov 0   ;;  %s543_s15 = smov 0  }
   0x3   :  { %s545_s16 = smov 0   ;;  %s547_s17 = smov 0  }
   0x4 LB: > { %s367_s18 = sadd.s32 4294967295, %s513_s17   ;;  %s368_s19 = sadd.s32 4294967294, %s513_s17   ;;  %s513_s17 = sphi %s547_s17, %s16_s17   ;;  %s509_s16 = sphi %s545_s16, %s652_s16   ;;  %s505_s15 = sphi %s543_s15, %s651_s15   ;;  %s501_s14 = sphi %s541_s14, %s650_s14   ;;  %s497_s13 = sphi %s539_s13, %s649_s13   ;;  %s493_s12 = sphi %s537_s12, %s648_s12  }
   0x5   : > { %s25_s20 = sadd.s32 1, %s509_s16  ;;  %s117_s21 = sadd.s32 1, %s501_s14 }
   0x6   : > { %p26_p0 = scmp.ge.s32.totalorder %s25_s20, 2  ;;  %p127_p1 = scmp.ne.s32.totalorder %s501_s14, %s497_s13 }
   0x7   : > { %p128_p2 = scmp.eq.s32.totalorder %s367_s18, 1  ;;  %p133_p3 = scmp.ne.s32.totalorder %s497_s13, %s493_s12 }
   0x8   : > { %s654_s20 = smov (%p26_p0, %s25_s20), 0  ;;  %p134_p5 = scmp.eq.s32.totalorder %s368_s19, 1 }
   0x9   : > { %p577_p4 = por %p128_p2, %p127_p1  ;;  %s113_s23 = ssub.s32 %s509_s16, %s654_s20 }
   0xa   : > { %p373_p6 = scmp.ge.s32.totalorder %s513_s17, 1  ;;  %p115_p7 = scmp.eq.s32.totalorder %s113_s23, 0 }
   0xb   : > { %p584_p8 = por %p134_p5, %p133_p3  ;;  %p177_p9 = scmp.lt.s32.totalorder %s513_s17, 3 }
   0xc   : > { %s590_s25 = scalar_select %p115_p7, %s501_s14, %s117_s21  }
   0xd   : > { %p178_p10 = pnand %p373_p6, %p177_p9 }
   0xe   : > { %p214_p11 = scmp.lt.s32.totalorder (!%p178_p10), %s505_s15, 1  ;;  %s209_s8 = sand.u32 (!%p178_p10), 1, %s497_s13  }
   0xf   : > { %181 = sbr.rel (%p178_p10) target bundleno = 169 (0xa9), region = 32  ;;  %s374_s9 = sshll.u32 (!%p178_p10), %s209_s8, 3 }
  0x10   : > { %s377_s10 = sshll.u32 (!%p178_p10), %s505_s15, 7  ;;  %s211_s11 = scalar_lea.vmem (!%p178_p10), [#allocation2], %s374_s9 }
  0x11   : > { %s262_s18 = sshll.u32 (!%p178_p10), %s211_s11, 4  ;;  %s260_s23 = scalar_lea.hbm (!%p178_p10), %s645_s3, %s377_s10  ;;  %s263_s18 = int_to_ptr.vmem [resolvable:$true] %s262_s18 }
  0x12   : > { %s247_s26 = scalar_lea.sflag (!%p178_p10), [#allocation3], %s209_s8  ;;  %s437_s27 = scalar_lea.vmem (!%p178_p10), %s263_s18, 128 }
  0x13   : > { %p438_p12 = scmp.ne.s32.totalorder (!%p178_p10), %s263_s18, %s437_s27  ;;  %s516_s28 = smov (!%p178_p10), [#allocation2]  }
  0x14   : > { %v229_v0 = vld [vmem:[%s643_s1] sm:$0xff]  ;;  %v515_v1 = vmov 0   ;;  %s215_s30 = scalar_select %p214_p11, %s505_s15, 1 }
  0x15   : > { %436 = vset.pattern.permute.xlu0 %v515_v1  ;;  %v236_v2 = vld [vmem:[%s644_s2] sm:$0xff]  ;;  %p439_p13 = pnand %p438_p12, %p577_p4  ;;  %s441_s29 = sshll.u32 %s516_s28, 4  ;;  %s442_s29 = int_to_ptr.vmem [resolvable:$false] %s441_s29 }
  0x16   : > { %232 = vperm.xlu0 %436, %v229_v0   ;;  %s375_s4 = sshll.u32 %s215_s30, 3  ;;  %s443_s15 = scalar_lea.vmem %s442_s29, 256 }
  0x17   : > { %s219_s7 = scalar_lea.vmem %s642_s0, %s375_s4  ;;  %p440_p0 = pneg %p439_p13 }
  0x18   : > { %v228_v4 = vld [vmem:[%s219_s7] sm:$0xff]  ;;  %p444_p1 = scmp.lt.s32.totalorder %s263_s18, %s442_s29  ;;  %p445_p2 = scmp.lt.s32.totalorder %s443_s15, %s437_s27 }
  0x1a   : > { %239 = vperm.xlu0 %436, %v236_v2   ;;  %p446_p3 = por %p445_p2, %p444_p1 }
  0x1c   : > { %p447_p5 = pnand %p446_p3, %p440_p0 }
  0x91   : > { %v233_v3 = vpop.permute.xlu0 %232 }
  0x92   : > { %v235_v5 = vmul.f32 %v233_v3, %v228_v4 }
  0x95   : > { %v240_v6 = vpop.permute.xlu0 %239 }
  0x96   : > { %v242_v7 = vadd.f32 %v240_v6, %v235_v5 }
  0x98   : > { %v243_v8 = vmax.f32 %v242_v7, 0.0 }
  0x9a   : > { %v244_v9 = vmin.f32 %v243_v8, 1.0 }
  0x9c   : > { %245 = vst [vmem:[%s211_s11] sm:$0xff] %v244_v9 }
  0x9d   : > { %450 = shalt.err (!%p447_p5)
}
  0x9e   : > { %s451_s30 = scalar_lea.hbm %s260_s23, 128  ;;  %s455_s6 = scalar_lea.hbm %s645_s3, 256 }
  0x9f   : > { %p452_p6 = scmp.ne.s32.totalorder %s260_s23, %s451_s30  ;;  %p456_p10 = scmp.lt.s32.totalorder %s260_s23, %s645_s3 }
  0xa0   : > { %p457_p11 = scmp.lt.s32.totalorder %s455_s6, %s451_s30 }
  0xa1   : > { %p453_p7 = pnand %p452_p6, %p577_p4 }
  0xa2   : > { %p458_p12 = por %p457_p11, %p456_p10 }
  0xa3   : > { %p454_p9 = pneg %p453_p7 }
  0xa5   : > { %p459_p13 = pnand %p458_p12, %p454_p9 }
  0xa7   : > { %462 = shalt.err (!%p459_p13)
}
  0xa8   : > { %380 = dma.vmem_to_hbm [thread:$0]  (%p577_p4), %s263_s18, 128, %s260_s23, %s247_s26  }
  0xa9 PF: > { %p386_p0 = scmp.ge.s32.totalorder %s513_s17, 2  ;;  %s274_s9 = sand.u32 1, %s493_s12  }
  0xaa   : > { %s275_s10 = scalar_lea.sflag [#allocation3], %s274_s9 }
  0xab   : > { %p383_p1 = pnand %p386_p0, %p584_p8 }
  0xad   : > { %p384_p2 = pneg %p383_p1 }
  0xaf   : > { %488 = dma.done.wait (%p384_p2), %s275_s10, 128  }
  0xb0   : > { %490 = vsyncadd (%p384_p2), %s275_s10, 4294967168  ;;  %s16_s17 = sadd.s32 1, %s513_s17   ;;  %s648_s12 = smov %s497_s13 }
  0xb1   : > { %p13_p3 = scmp.ge.s32.totalorder %s16_s17, 4   ;;  %s649_s13 = smov %s501_s14 }
  0xb2   : > { %s650_s14 = smov %s590_s25  ;;  %s651_s15 = smov %s509_s16 }
  0xb3   : > { %s652_s16 = smov %s654_s20  ;;  %15 = sbr.rel (!%p13_p3) target bundleno = 4 (0x4), region = 73 }
  0xb8   :  { %280 = vsyncpa [#allocation3], 1 }
  0xb9   :  { %282 = vsyncpa [#allocation3 + $0x1], 1 }

</bundles_post_ra>
